<compile_context>
chip_gen: v7x
topology: tpu7x:2x2x1
jax: 0.10.0
libtpu: 0.0.40
codegen_flags: <defaults>
</compile_context>

<pallas_src>
import functools

import jax
import jax.numpy as jnp
from jax.experimental import pallas as pl
from jax.experimental.pallas import tpu as pltpu


# ----------------------------- Pallas kernel --------------------------------

def _make_gate_kernel(op: str, needs_q: bool):
    """Kernel for one LogicOperation (op resolved at trace time)."""

    def kernel(scalars_ref, *refs):
        if needs_q:
            p_ref, q_ref, o_ref = refs
        else:
            p_ref, o_ref = refs

        hT = scalars_ref[0]      # 0.5  * temperature (folded in the wrapper)
        qT = scalars_ref[1]      # 0.25 * temperature
        b = scalars_ref[2]       # bias

        p = p_ref[...].astype(jnp.float32)
        q = q_ref[...].astype(jnp.float32) if needs_q else None

        def sig(x):
            # sigmoid(T*x) = 0.5*(tanh(0.5*T*x)+1): one EUP push + one VPU mul.
            return 0.5 * (jnp.tanh(hT * x) + 1.0)

        def sig_shift(prod):
            # sigmoid(T*(prod - 0.5)) = 0.5*(tanh(0.5*T*prod - 0.25*T)+1)
            return 0.5 * (jnp.tanh(hT * prod - qT) + 1.0)

        # Smooth logic primitives — exact transcription of the PyTorch math
        # (including the double '+bias' composition in implies/iff).
        if op == "not":
            out = 1.0 - sig(p) + b
        elif op == "or":
            out = 1.0 - (1.0 - sig(p)) * (1.0 - sig(q)) + b
        elif op == "and":
            out = sig_shift(sig(p) * sig(q)) + b
        elif op == "implies":
            sp = sig(p)
            sq = sig(q)
            not_p = 1.0 - sp + b
            out = 1.0 - (1.0 - sig(not_p)) * (1.0 - sq) + b
        elif op == "iff":
            sp = sig(p)
            sq = sig(q)
            one_m_sp = 1.0 - sp
            one_m_sq = 1.0 - sq
            not_p = one_m_sp + b
            not_q = one_m_sq + b
            p_imp_q = 1.0 - (1.0 - sig(not_p)) * one_m_sq + b
            q_imp_p = 1.0 - (1.0 - sig(not_q)) * one_m_sp + b
            out = sig_shift(sig(p_imp_q) * sig(q_imp_p)) + b
        else:
            raise ValueError(f"Unsupported operation: {op}")

        # TODO(synk): on v5e, if bundle dumps show vst-slot-bound spills for
        # 'iff'/'implies', strip-mine the elementwise chain over row sub-slices.
        o_ref[...] = out.astype(o_ref.dtype)

    return kernel


# ------------------------------ Python wrapper -------------------------------

_LANE_CANDIDATES = (1024, 512, 256, 128)      # lane-dense widths (mult. of 128)
_VMEM_LIMIT_BYTES = 48 * 1024 * 1024          # raises v5e default, <= v7x 64 MiB

# rough per-element cost for the scheduler hint
_TRANSC = {"not": 1, "or": 2, "and": 3, "implies": 3, "iff": 7}
_FLOPS = {"not": 3, "or": 7, "and": 6, "implies": 10, "iff": 24}


def _round_up(x: int, m: int) -> int:
    return -(-x // m) * m


@functools.lru_cache(maxsize=None)
def _rows_budget(needs_q: bool) -> int:
    """Per-block rows at 1024 lanes, by TPU generation and operand count."""
    try:
        kind = jax.devices()[0].device_kind.lower()
    except Exception:
        kind = ""
    older = any(tag in kind for tag in ("v2", "v3", "v4", "v5"))
    base = 512 if older else 1024             # 2 MiB (v5e-) / 4 MiB (v6e/v7x) f32
    # 'not' has only 1 input + 1 output -> 2x rows at the same VMEM footprint.
    return base * (1 if needs_q else 2)


def _layout(n: int):
    """Pick (lanes, n_pad) so that padding is avoided whenever possible."""
    for lanes in _LANE_CANDIDATES:
        if n % lanes == 0:
            return lanes, n
    return 128, _round_up(n, 128)             # minimal pad fallback


@functools.partial(jax.jit, static_argnames=("operation",))
def differentiable_logic_gate(operation, temperature, bias, p, q=None):
    """Forward pass of DifferentiableLogicGate.

    operation:   one of 'and', 'or', 'not', 'implies', 'iff' (static)
    temperature: f32 scalar parameter (init 5.0 in the module)
    bias:        f32 scalar parameter (init 0.0, shape (1,) in the module)
    p, q:        input tensors of identical shape (q unused / omitted for 'not')
    """
    needs_q = operation != "not"
    orig_shape = p.shape
    n = p.size
    out_dtype = p.dtype if not needs_q else jnp.promote_types(p.dtype, q.dtype)

    lanes, n_pad = _layout(n)
    rows = n_pad // lanes

    tile_budget = _rows_budget(needs_q) * (1024 // lanes)
    if rows <= tile_budget:
        if rows >= 16:
            # Keep at least 2 grid steps so "parallel" shards the grid across
            # v7x's two TensorCores (a ~0.35 us extra step elsewhere is noise).
            tile_r = _round_up(pl.cdiv(rows, 2), 8)
        else:
            tile_r = rows                      # single full-extent block
    else:
        tile_r = tile_budget
    grid = pl.cdiv(rows, tile_r)

    def to_slab(x):
        flat = x.reshape(-1)
        if n_pad != n:
            flat = jnp.pad(flat, (0, n_pad - n))
        return flat.reshape(rows, lanes)

    inputs = [to_slab(p)]
    if needs_q:
        inputs.append(to_slab(q))

    t = jnp.asarray(temperature, jnp.float32).reshape(())
    scalars = jnp.stack([0.5 * t, 0.25 * t,
                         jnp.asarray(bias, jnp.float32).reshape(())])

    bytes_accessed = (sum(x.size * x.dtype.itemsize for x in inputs)
                      + n_pad * jnp.dtype(out_dtype).itemsize
                      + scalars.size * 4)
    cost = pl.CostEstimate(
        flops=_FLOPS[operation] * n_pad,
        transcendentals=_TRANSC[operation] * n_pad,
        bytes_accessed=bytes_accessed,
    )

    data_spec = pl.BlockSpec((tile_r, lanes), lambda i: (i, 0))

    out = pl.pallas_call(
        _make_gate_kernel(operation, needs_q),
        out_shape=jax.ShapeDtypeStruct((rows, lanes), out_dtype),
        grid=(grid,),
        in_specs=[pl.BlockSpec(memory_space=pltpu.MemorySpace.SMEM)]  # scalars
                 + [data_spec for _ in inputs],
        out_specs=data_spec,
        compiler_params=pltpu.CompilerParams(
            dimension_semantics=("parallel",),
            vmem_limit_bytes=_VMEM_LIMIT_BYTES),
        cost_estimate=cost,
    )(scalars, *inputs)

    if n_pad != n:
        out = out.reshape(-1)[:n]
    return out.reshape(orig_shape)


# --------------------------- pure-JAX reference ------------------------------

def _ref_forward(operation, T, b, p, q):
    sig = lambda x: jax.nn.sigmoid(T * x)
    s_not = lambda x: 1.0 - sig(x) + b
    s_or = lambda a, c: 1.0 - (1.0 - sig(a)) * (1.0 - sig(c)) + b
    s_and = lambda a, c: jax.nn.sigmoid(T * (sig(a) * sig(c) - 0.5)) + b
    if operation == "and":
        return s_and(p, q)
    if operation == "or":
        return s_or(p, q)
    if operation == "not":
        return s_not(p)
    if operation == "implies":
        return s_or(s_not(p), q)
    if operation == "iff":
        return s_and(s_or(s_not(p), q), s_or(s_not(q), p))
    raise ValueError(operation)


# ---------------------------------- main -------------------------------------

if __name__ == "__main__":
    key = jax.random.PRNGKey(0)
    k_p, k_q = jax.random.split(key)

    # Small NCHW-style activation tensors, matching the PyTorch convention.
    p = jax.random.normal(k_p, (2, 4, 16, 16), dtype=jnp.float32)
    q = jax.random.normal(k_q, (2, 4, 16, 16), dtype=jnp.float32)

    # Deterministic parameter init, matching nn.Module.__init__:
    temperature = jnp.float32(5.0)   # nn.Parameter(torch.tensor(5.0))
    bias = jnp.float32(0.0)          # nn.Parameter(torch.zeros(1))

    ok = True
    for op in ("and", "or", "not", "implies", "iff"):
        if op == "not":
            out = differentiable_logic_gate(op, temperature, bias, p)
        else:
            out = differentiable_logic_gate(op, temperature, bias, p, q)
        out = jax.block_until_ready(out)
        ref = _ref_forward(op, temperature, bias, p, q)
        if out.shape != p.shape or not jnp.allclose(out, ref, atol=1e-5, rtol=1e-5):
            ok = False
            print(f"MISMATCH for op={op}: max err "
                  f"{float(jnp.max(jnp.abs(out - ref)))}")

    if ok:
        print("KERNEL_OK")
</pallas_src>

<mosaic_0001>
module attributes {stable_mosaic.version = 11 : i64} {
  func.func @kernel(%arg0: i32, %arg1: memref<3xf32, #tpu.memory_space<smem>>, %arg2: memref<2x1024xf32, #tpu.memory_space<vmem>>, %arg3: memref<2x1024xf32, #tpu.memory_space<vmem>>, %arg4: memref<2x1024xf32, #tpu.memory_space<vmem>>) attributes {dimension_semantics = [#tpu.dimension_semantics<parallel>], iteration_bounds = array<i64: 1>, scalar_prefetch = 0 : i64, scratch_operands = 0 : i64, tpu.core_type = #tpu.core_type<tc>, window_params = [{transform_indices = @transform_0, window_bounds = array<i64: 3>}, {transform_indices = @transform_1, window_bounds = array<i64: 2, 1024>}, {transform_indices = @transform_2, window_bounds = array<i64: 2, 1024>}, {transform_indices = @transform_3, window_bounds = array<i64: 2, 1024>}]} {
    %c0 = arith.constant 0 : index
    %0 = memref.load %arg1[%c0] : memref<3xf32, #tpu.memory_space<smem>>
    %c1 = arith.constant 1 : index
    %1 = memref.load %arg1[%c1] : memref<3xf32, #tpu.memory_space<smem>>
    %c2 = arith.constant 2 : index
    %2 = memref.load %arg1[%c2] : memref<3xf32, #tpu.memory_space<smem>>
    %c0_0 = arith.constant 0 : index
    %c0_1 = arith.constant 0 : index
    %3 = vector.load %arg2[%c0_0, %c0_1] : memref<2x1024xf32, #tpu.memory_space<vmem>>, vector<2x1024xf32>
    %c0_2 = arith.constant 0 : index
    %c0_3 = arith.constant 0 : index
    %4 = vector.load %arg3[%c0_2, %c0_3] : memref<2x1024xf32, #tpu.memory_space<vmem>>, vector<2x1024xf32>
    %5 = vector.broadcast %0 : f32 to vector<2x1024xf32>
    %6 = arith.mulf %5, %3 : vector<2x1024xf32>
    %7 = math.tanh %6 : vector<2x1024xf32>
    %cst = arith.constant 1.000000e+00 : f32
    %8 = vector.broadcast %cst : f32 to vector<2x1024xf32>
    %9 = arith.addf %7, %8 : vector<2x1024xf32>
    %cst_4 = arith.constant 5.000000e-01 : f32
    %10 = vector.broadcast %cst_4 : f32 to vector<2x1024xf32>
    %11 = arith.mulf %10, %9 : vector<2x1024xf32>
    %12 = vector.broadcast %0 : f32 to vector<2x1024xf32>
    %13 = arith.mulf %12, %4 : vector<2x1024xf32>
    %14 = math.tanh %13 : vector<2x1024xf32>
    %cst_5 = arith.constant 1.000000e+00 : f32
    %15 = vector.broadcast %cst_5 : f32 to vector<2x1024xf32>
    %16 = arith.addf %14, %15 : vector<2x1024xf32>
    %cst_6 = arith.constant 5.000000e-01 : f32
    %17 = vector.broadcast %cst_6 : f32 to vector<2x1024xf32>
    %18 = arith.mulf %17, %16 : vector<2x1024xf32>
    %19 = arith.mulf %11, %18 : vector<2x1024xf32>
    %20 = vector.broadcast %0 : f32 to vector<2x1024xf32>
    %21 = arith.mulf %20, %19 : vector<2x1024xf32>
    %22 = vector.broadcast %1 : f32 to vector<2x1024xf32>
    %23 = arith.subf %21, %22 : vector<2x1024xf32>
    %24 = math.tanh %23 : vector<2x1024xf32>
    %cst_7 = arith.constant 1.000000e+00 : f32
    %25 = vector.broadcast %cst_7 : f32 to vector<2x1024xf32>
    %26 = arith.addf %24, %25 : vector<2x1024xf32>
    %cst_8 = arith.constant 5.000000e-01 : f32
    %27 = vector.broadcast %cst_8 : f32 to vector<2x1024xf32>
    %28 = arith.mulf %27, %26 : vector<2x1024xf32>
    %29 = vector.broadcast %2 : f32 to vector<2x1024xf32>
    %30 = arith.addf %28, %29 : vector<2x1024xf32>
    %c0_9 = arith.constant 0 : index
    %c0_10 = arith.constant 0 : index
    %31 = vector.load %arg4[%c0_9, %c0_10] : memref<2x1024xf32, #tpu.memory_space<vmem>>, vector<2x1024xf32>
    tpu.vector_store %arg4[%c0_9, %c0_10], %30 {strides = array<i32>} : memref<2x1024xf32, #tpu.memory_space<vmem>>, vector<2x1024xf32>,
    return
  }
  func.func @transform_0(%arg0: i32) -> i32 {
    %c0_i32 = arith.constant 0 : i32
    %c0_i32_0 = arith.constant 0 : i32
    return %c0_i32 : i32
  }
  func.func @transform_1(%arg0: i32) -> (i32, i32) {
    %c0_i32 = arith.constant 0 : i32
    %c0_i32_0 = arith.constant 0 : i32
    return %arg0, %c0_i32 : i32, i32
  }
  func.func @transform_2(%arg0: i32) -> (i32, i32) {
    %c0_i32 = arith.constant 0 : i32
    %c0_i32_0 = arith.constant 0 : i32
    return %arg0, %c0_i32 : i32, i32
  }
  func.func @transform_3(%arg0: i32) -> (i32, i32) {
    %c0_i32 = arith.constant 0 : i32
    %c0_i32_0 = arith.constant 0 : i32
    return %arg0, %c0_i32 : i32, i32
  }
}

</mosaic_0001>

<bundles_post_ra>
// kernel: differentiable_logic_gate.1
= control target key start
LH: loop header
LB: loop body
LE: loop exit
PB: predicated region body
PF: predicated region fallthrough
CT: control target
= control target key end

     0   :  { %8 = vsyncpa [#allocation3], 0  ;;  %s145_s0 = inlined_call_operand.vmem [shape: f32[3], index: 0, kind: input, shape index: {}]   ;;  %s146_s1 = inlined_call_operand.vmem [shape: f32[2,1024], index: 1, kind: input, shape index: {}]   ;;  %s147_s2 = inlined_call_operand.vmem [shape: f32[2,1024], index: 2, kind: input, shape index: {}]   ;;  %s148_s3 = inlined_call_operand.vmem [shape: f32[2,1024], index: 3, kind: output, shape index: {}]  }
   0x1   :  { %s15_s14 = sshll.u32 %s145_s0, 4  ;;  %s16_s14 = int_to_ptr.vmem [resolvable:$true] %s15_s14 }
   0x2   :  { %s89_s15 = scalar_lea.vmem %s16_s14, 16  ;;  %p94_p1 = scmp.lt.s32.totalorder %s16_s14, %s16_s14 }
   0x3   :  { %p90_p0 = scmp.ne.s32.totalorder %s16_s14, %s89_s15  ;;  %p95_p2 = scmp.lt.s32.totalorder %s89_s15, %s89_s15 }
   0x5   :  { %p96_p3 = por %p95_p2, %p94_p1 }
   0x7   :  { %p97_p4 = pnand %p96_p3, %p90_p0 }
   0x9   :  { %100 = shalt.err (!%p97_p4)
}
   0xa   :  { %s103_s16 = smov [#allocation2]  }
   0xb   :  { %18 = dma.vmem_to_smem %s16_s14, 16, %s103_s16, [#allocation3]  }
   0xc   :  { %101 = dma.done.wait [#allocation3], 16  }
   0xd   :  { %102 = vsyncadd [#allocation3], 4294967280 }
   0xe   :  { %26 = sfence }
   0xf   :  { %s27_s17 = sld [smem:[#allocation2]]  ;;  %v30_v0 = vld [vmem:[%s146_s1] sm:$0xff]  ;;  %v31_v2 = vld [vmem:[%s146_s1 + $0x8] sm:$0xff]  ;;  %s74_s25 = sld [smem:[#allocation2 + $0x1]] }
  0x10   :  { %v32_v1 = vld [vmem:[%s147_s2] sm:$0xff]  ;;  %v33_v3 = vld [vmem:[%s147_s2 + $0x8] sm:$0xff]  ;;  %s75_s1 = sld [smem:[#allocation2 + $0x2]] }
  0x15   :  { %v34_v4 = vstv %s27_s17  ;;  %v55_v22 = vstv %s74_s25 }
  0x16   :  { %v35_v5 = vmul.f32 %v34_v4, %v30_v0  ;;  %v43_v6 = vmul.f32 %v34_v4, %v32_v1  ;;  %v36_v7 = vmul.f32 %v34_v4, %v31_v2  ;;  %v44_v8 = vmul.f32 %v34_v4, %v33_v3 }
  0x17   :  { %v64_v31 = vstv %s75_s1 }
  0x18   :  { %77 = vtanh.f32 %v35_v5 }
  0x19   :  { %79 = vtanh.f32 %v43_v6 }
  0x1a   :  { %81 = vtanh.f32 %v36_v7 }
  0x1b   :  { %83 = vtanh.f32 %v44_v8 }
  0x22   :  { %v78_v9 = vpop.eup %77 }
  0x23   :  { %v80_v10 = vpop.eup %79  ;;  %v39_v11 = vadd.f32 1.0, %v78_v9 }
  0x24   :  { %v82_v12 = vpop.eup %81  ;;  %v47_v13 = vadd.f32 1.0, %v80_v10 }
  0x25   :  { %v84_v14 = vpop.eup %83  ;;  %v41_v15 = vmul.f32 0.5, %v39_v11  ;;  %v40_v16 = vadd.f32 1.0, %v82_v12 }
  0x26   :  { %v49_v17 = vmul.f32 0.5, %v47_v13  ;;  %v48_v18 = vadd.f32 1.0, %v84_v14 }
  0x27   :  { %v42_v19 = vmul.f32 0.5, %v40_v16 }
  0x28   :  { %v51_v20 = vmul.f32 %v49_v17, %v41_v15  ;;  %v50_v21 = vmul.f32 0.5, %v48_v18 }
  0x2a   :  { %v53_v23 = vmul.f32 %v51_v20, %v34_v4  ;;  %v52_v24 = vmul.f32 %v50_v21, %v42_v19 }
  0x2c   :  { %v56_v25 = vsub.f32 %v53_v23, %v55_v22  ;;  %v54_v26 = vmul.f32 %v52_v24, %v34_v4 }
  0x2e   :  { %85 = vtanh.f32 %v56_v25  ;;  %v57_v27 = vsub.f32 %v54_v26, %v55_v22 }
  0x30   :  { %87 = vtanh.f32 %v57_v27 }
  0x38   :  { %v86_v28 = vpop.eup %85 }
  0x39   :  { %v60_v29 = vadd.f32 1.0, %v86_v28 }
  0x3a   :  { %v88_v30 = vpop.eup %87 }
  0x3b   :  { %v62_v32 = vmul.f32 0.5, %v60_v29  ;;  %v61_v33 = vadd.f32 1.0, %v88_v30 }
  0x3d   :  { %v65_v34 = vadd.f32 %v64_v31, %v62_v32  ;;  %v63_v35 = vmul.f32 0.5, %v61_v33 }
  0x3f   :  { %67 = vst [vmem:[%s148_s3] sm:$0xff] %v65_v34  ;;  %v66_v36 = vadd.f32 %v64_v31, %v63_v35 }
  0x41   :  { %68 = vst [vmem:[%s148_s3 + $0x8] sm:$0xff] %v66_v36 }
  0x42   :  { %73 = vsyncpa [#allocation3], 1 }

</bundles_post_ra>
